<compile_context>
chip_gen: v6e
topology: v6e:2x2x1
jax: 0.10.0
libtpu: 0.0.40
codegen_flags: <defaults>
</compile_context>

<pallas_src>
import functools

import jax
import jax.numpy as jnp
import numpy as np
from jax.experimental import pallas as pl
from jax.experimental.pallas import tpu as pltpu


def _round_up(x, m):
    return ((x + m - 1) // m) * m


# ----------------------------------------------------------------------------
# Kernel 1: texture_loss_masks(img_pred, img_gt, mask_gt, mask_pred, avg=False)
#   per-sample: sum(|pred*mask_pred - gt*mask_gt|)   (divide hoisted to wrapper)
# ----------------------------------------------------------------------------
def _tex_mask_loss_kernel(pred_ref, gt_ref, mg_ref, mp_ref, out_ref, *, n_channels, hw):
    mp = mp_ref[...]                                   # (S, HWp)
    mg = mg_ref[...]                                   # (S, HWp)
    acc = jnp.zeros_like(mp)                           # single (S, HWp) accumulator
    for c in range(n_channels):                        # static unroll (C == 3)
        lo = c * hw                                    # 128-aligned lane slice
        acc = acc + jnp.abs(pred_ref[:, lo:lo + hw] * mp - gt_ref[:, lo:lo + hw] * mg)
    total = jnp.sum(acc, axis=1, keepdims=True)        # one cross-lane reduce per block
    # Lane-dense, unmasked (S, 128) store; wrapper reads lane 0.
    out_ref[...] = jnp.broadcast_to(total, out_ref.shape)


def texture_loss_masks_per_sample(img_pred, img_gt, mask_gt, mask_pred,
                                  *, samples_per_block=None):
    BK, C, H, W = img_pred.shape
    HW = H * W
    HWp = _round_up(HW, 128)

    # Channels folded into lanes: (BK, C*HWp); masks (BK, HWp).
    def prep_img(x):
        x = x.reshape(BK, C, HW).astype(jnp.float32)
        if HWp != HW:
            x = jnp.pad(x, ((0, 0), (0, 0), (0, HWp - HW)))
        return x.reshape(BK, C * HWp)

    def prep_mask(m):
        m = m.reshape(BK, HW).astype(jnp.float32)
        if HWp != HW:
            m = jnp.pad(m, ((0, 0), (0, HWp - HW)))
        return m

    pred, gt = prep_img(img_pred), prep_img(img_gt)
    mg, mp = prep_mask(mask_gt), prep_mask(mask_pred)

    # Adaptive samples-per-block: target ~2 MiB of input per grid step, multiple of 8,
    # clamped so the double-buffered working set stays v7x-safe (~40 MiB).
    bytes_per_sample = (2 * C + 2) * HWp * 4
    if samples_per_block is None:
        S = max(8, min(256, ((2 * 1024 * 1024) // bytes_per_sample) // 8 * 8))
        while S > 8 and 2 * S * bytes_per_sample > 40 * 1024 * 1024:
            S -= 8
    else:
        S = max(8, (samples_per_block // 8) * 8)
    S = min(S, _round_up(BK, 8))
    BK_pad = _round_up(BK, S)
    if BK_pad != BK:
        padn = BK_pad - BK
        pred = jnp.pad(pred, ((0, padn), (0, 0)))
        gt = jnp.pad(gt, ((0, padn), (0, 0)))
        mg = jnp.pad(mg, ((0, padn), (0, 0)))
        mp = jnp.pad(mp, ((0, padn), (0, 0)))

    vmem_limit = int(min(100 << 20,
                         max(32 << 20, 2 * S * bytes_per_sample + 2 * S * 128 * 4 + (4 << 20))))

    out = pl.pallas_call(
        functools.partial(_tex_mask_loss_kernel, n_channels=C, hw=HWp),
        out_shape=jax.ShapeDtypeStruct((BK_pad, 128), jnp.float32),
        grid_spec=pltpu.PrefetchScalarGridSpec(
            num_scalar_prefetch=0,
            grid=(BK_pad // S,),
            in_specs=[
                pl.BlockSpec((S, C * HWp), lambda i: (i, 0)),
                pl.BlockSpec((S, C * HWp), lambda i: (i, 0)),
                pl.BlockSpec((S, HWp), lambda i: (i, 0)),
                pl.BlockSpec((S, HWp), lambda i: (i, 0)),
            ],
            out_specs=pl.BlockSpec((S, 128), lambda i: (i, 0)),
        ),
        compiler_params=pltpu.CompilerParams(
            dimension_semantics=("parallel",),
            vmem_limit_bytes=vmem_limit),
    )(pred, gt, mg, mp)
    sums = out[:BK, 0]
    return sums / float(C * H * W)          # scalar divide hoisted out of the kernel


# ----------------------------------------------------------------------------
# Kernel 2: texture_dt_loss — grid_sample(dist_transf, flow).mean()
#   Separable bilinear gather: dt (N, Kp) @ column-selector (Kp, PT) on the MXU,
#   row-selector applied via elementwise multiply + reduce.  Zeros padding,
#   align_corners=False.  P tiled as a trailing "arbitrary" grid axis; per-batch
#   sum accumulated directly into the revisited lane-dense output block.
# ----------------------------------------------------------------------------
def _dt_sample_kernel(flow_ref, dt_ref, out_ref, *, N):
    t = pl.program_id(1)

    @pl.when(t == 0)
    def _():
        out_ref[0] = jnp.zeros_like(out_ref[0])

    xy = flow_ref[0]               # (2, PT): row 0 = x -> dt columns, row 1 = y -> rows
    x = xy[0:1, :]
    y = xy[1:2, :]
    dt = dt_ref[0]                 # (N, Kp)  columns >= N are zero padding
    PT = xy.shape[-1]
    Kp = dt.shape[-1]

    def axis_weights(c, rows):
        # Bilinear selector/weights along one axis; zeros padding is expressed by
        # folding validity into the per-point weights (out-of-range corners -> 0).
        ic = ((c + 1.0) * N - 1.0) * 0.5               # align_corners=False unnormalize
        c0f = jnp.floor(ic)
        w1 = ic - c0f
        w0v = jnp.where((c0f >= 0.0) & (c0f <= N - 1.0), 1.0 - w1, 0.0)   # (1, PT)
        w1v = jnp.where((c0f >= -1.0) & (c0f <= N - 2.0), w1, 0.0)        # (1, PT)
        c1 = jnp.clip(c0f, -1.0, float(N - 1)).astype(jnp.int32) + 1      # in [0, N]
        iota = jax.lax.broadcasted_iota(jnp.int32, (rows, PT), 0)
        # Single select-chain builds both corner selectors: 2 compares + 2 selects per
        # element (no bool->f32 converts, no broadcast multiplies) in the binding VPU slot.
        return jnp.where(iota == c1, w1v, jnp.where(iota == (c1 - 1), w0v, 0.0))

    col_w = axis_weights(x, Kp)    # (Kp, PT)  MXU-friendly weighted column gather
    row_w = axis_weights(y, N)     # (N,  PT)
    col_interp = jnp.dot(dt, col_w, preferred_element_type=jnp.float32)   # (N, PT)
    # TODO(synk): the per-batch running sum is a single f32; per-tile partial sums
    # reduced in the wrapper would improve precision for very large P.
    part = jnp.sum(row_w * col_interp)                                    # scalar
    out_ref[0] = out_ref[0] + part                                        # (1, 128) lanes


def texture_dt_loss_fn(tex_flow, dts_barrier, *, points_block=4096):
    B, F, T, _, _ = tex_flow.shape
    N = dts_barrier.shape[-1]
    P = F * T * T
    Kp = _round_up(N, 128)

    # Keep ~3 live (Kp, PT) f32 temporaries under ~12 MiB -> safe on v7x (64 MiB VMEM).
    pt_cap = max(128, ((2 ** 20) // Kp) // 128 * 128)
    PT = min(points_block, pt_cap, _round_up(P, 128))
    P_pad = _round_up(P, PT)

    flow = tex_flow.reshape(B, P, 2).astype(jnp.float32)
    xy = jnp.transpose(flow, (0, 2, 1))                         # (B, 2, P): one stream
    if P_pad != P:
        # Out-of-range coords -> zero contribution (grid_sample zeros padding).
        xy = jnp.pad(xy, ((0, 0), (0, 0), (0, P_pad - P)), constant_values=2.0)
    dt2d = dts_barrier.reshape(B, N, N).astype(jnp.float32)     # row = y, col = x
    if Kp != N:
        dt2d = jnp.pad(dt2d, ((0, 0), (0, 0), (0, Kp - N)))     # zero-pad contraction dim

    vmem_est = 3 * Kp * PT * 4 + 2 * (2 * PT * 4 + N * Kp * 4 + 128 * 4) + (8 << 20)

    sums = pl.pallas_call(
        functools.partial(_dt_sample_kernel, N=N),
        out_shape=jax.ShapeDtypeStruct((B, 1, 128), jnp.float32),
        grid_spec=pltpu.PrefetchScalarGridSpec(
            num_scalar_prefetch=0,
            grid=(B, P_pad // PT),
            in_specs=[
                pl.BlockSpec((1, 2, PT), lambda b, t: (b, 0, t)),
                pl.BlockSpec((1, N, Kp), lambda b, t: (b, 0, 0)),
            ],
            out_specs=pl.BlockSpec((1, 1, 128), lambda b, t: (b, 0, 0)),
        ),
        compiler_params=pltpu.CompilerParams(
            dimension_semantics=("parallel", "arbitrary"),
            vmem_limit_bytes=int(max(32 << 20, vmem_est))),
    )(xy, dt2d)
    return jnp.sum(sums[:, 0, 0]) / float(B * P)


# ----------------------------------------------------------------------------
# Kernel 3: TexCycle — avg_flow = mean(flow over nr*nr) with nf on lanes;
#   visible-face mask via a membership test over the whole (2-D dense) aggr block
#   with a pure-VPU running max; loss = MSE(avg_flow*mask, prob*mask)
#   (normalization in the wrapper).
# ----------------------------------------------------------------------------
def _tex_cycle_kernel(flow_ref, prob_ref, aggr_ref, sum_ref, avg_ref, *, nrr, rc):
    flow = flow_ref[0]                                          # (2*nrr, nf_pad)
    nf_pad = flow.shape[-1]
    avg_x = jnp.mean(flow[0:nrr, :], axis=0, keepdims=True)     # (1, nf_pad)
    avg_y = jnp.mean(flow[nrr:2 * nrr, :], axis=0, keepdims=True)
    avg = jnp.concatenate([avg_x, avg_y], axis=0)               # (2, nf_pad)
    avg_ref[0] = avg                                            # lane-dense store

    # Membership test: face f is visible iff any aggr pixel id equals f.
    # Running max over 128-pixel rows is pure VPU; one lane reduce at the end.
    fid = jax.lax.broadcasted_iota(jnp.int32, (nf_pad, 128), 0)

    def body(r, m):
        row = aggr_ref[0, pl.ds(r, 1), :]                       # (1, 128) int32, pad = -1
        return jnp.maximum(m, (fid == row).astype(jnp.float32))

    m = jax.lax.fori_loop(0, rc, body, jnp.zeros((nf_pad, 128), jnp.float32))
    mask = jnp.broadcast_to(jnp.max(m, axis=1, keepdims=True), (nf_pad, 128))

    d2 = (avg - prob_ref[0]) ** 2                               # (2, nf_pad)
    masked = jnp.dot(d2, mask, preferred_element_type=jnp.float32)   # (2, 128), eq. cols
    sum_ref[0] = jnp.sum(masked, axis=0, keepdims=True)              # (1, 128) lane-dense


def tex_cycle_fn(flow, prob, aggr_info):
    nb, nf, nr, _, _ = flow.shape
    nrr = nr * nr
    npix = aggr_info.shape[-1]
    nf_pad = _round_up(nf, 128)
    npix_pad = _round_up(npix, 128)
    RC = npix_pad // 128

    # Coord-major rows (x rows then y rows), nf on lanes -> no sublane-2 padding.
    flow_t = flow.reshape(nb, nf, nrr, 2).transpose(0, 3, 2, 1)     # (nb, 2, nrr, nf)
    flow_t = flow_t.reshape(nb, 2 * nrr, nf).astype(jnp.float32)
    prob_t = jnp.transpose(prob.astype(jnp.float32), (0, 2, 1))     # (nb, 2, nf)
    if nf_pad != nf:
        flow_t = jnp.pad(flow_t, ((0, 0), (0, 0), (0, nf_pad - nf)))
        prob_t = jnp.pad(prob_t, ((0, 0), (0, 0), (0, nf_pad - nf)))
    aggr = aggr_info.astype(jnp.int32)
    if npix_pad != npix:
        aggr = jnp.pad(aggr, ((0, 0), (0, npix_pad - npix)), constant_values=-1)
    aggr = aggr.reshape(nb, RC, 128)                                 # 2-D dense layout

    sums, avg_t = pl.pallas_call(
        functools.partial(_tex_cycle_kernel, nrr=nrr, rc=RC),
        out_shape=(
            jax.ShapeDtypeStruct((nb, 1, 128), jnp.float32),
            jax.ShapeDtypeStruct((nb, 2, nf_pad), jnp.float32),
        ),
        grid_spec=pltpu.PrefetchScalarGridSpec(
            num_scalar_prefetch=0,
            grid=(nb,),
            in_specs=[
                pl.BlockSpec((1, 2 * nrr, nf_pad), lambda b: (b, 0, 0)),
                pl.BlockSpec((1, 2, nf_pad), lambda b: (b, 0, 0)),
                pl.BlockSpec((1, RC, 128), lambda b: (b, 0, 0)),
            ],
            out_specs=[
                pl.BlockSpec((1, 1, 128), lambda b: (b, 0, 0)),
                pl.BlockSpec((1, 2, nf_pad), lambda b: (b, 0, 0)),
            ],
        ),
        compiler_params=pltpu.CompilerParams(dimension_semantics=("parallel",)),
    )(flow_t, prob_t, aggr)

    loss = jnp.sum(sums[:, 0, 0]) / float(nb * nf * 2)
    avg_flow = jnp.transpose(avg_t[:, :, :nf], (0, 2, 1))    # (nb, nf, 2)
    # NOTE: TexCycle returns avg_flow[0, 0:10, :]; JAX clamps the slice if nf < 10.
    return loss, avg_flow[0, 0:10, :]


# ----------------------------------------------------------------------------
# MultiTextureLoss.forward
# ----------------------------------------------------------------------------
def multi_texture_loss_forward(vs, fs, cams_all_hypo, cam_probs, proj_cam, rgbs,
                               masks_gt, masks_pred, tx, tex_flow, dts_barrier,
                               texture_pred, p2f_info, aggr_info_raw,
                               num_hypo_cams, image_size):
    bs = vs.shape[0]
    K = num_hypo_cams

    # TODO(synk): SoftRenderer / NeuralRenderer rasterization has no Pallas equivalent;
    # texture_pred (renderer RGB), p2f_info and aggr_info_raw (hard renderer) are inputs.
    # TODO(synk): PerceptualTextureLoss (VGG features) is unavailable; the module's
    # texture_loss_masks(..., avg=False) branch is used instead.

    imgs = jnp.broadcast_to(rgbs[:, None], (bs, K) + rgbs.shape[1:]) \
              .reshape(-1, 3, image_size, image_size)
    masks_gt_rep = jnp.broadcast_to(masks_gt[:, None], (bs, K, image_size, image_size)) \
                      .reshape(-1, image_size, image_size)

    per_sample = texture_loss_masks_per_sample(texture_pred, imgs, masks_gt_rep, masks_pred)
    tex_loss = (per_sample.reshape(bs, K) * cam_probs).sum(axis=1).mean()

    tex_dt_loss = texture_dt_loss_fn(tex_flow, dts_barrier)

    aggr_info = aggr_info_raw[:, 1, :, :].reshape(bs, -1)
    tex_cycle_loss, _avg_flow = tex_cycle_fn(tex_flow, p2f_info, aggr_info)

    return tex_loss, tex_dt_loss, tex_cycle_loss, texture_pred


# --------------------------- pure-JAX references ----------------------------
def _ref_texture_mask_loss(pred, gt, mg, mp):
    diff = jnp.abs(pred * mp[:, None] - gt * mg[:, None])
    return jnp.sum(diff, axis=(1, 2, 3)) / float(diff.shape[1] * diff.shape[2] * diff.shape[3])


def _ref_texture_dt_loss(tex_flow, dts_barrier):
    B = tex_flow.shape[0]
    N = dts_barrier.shape[-1]
    flow = tex_flow.reshape(B, -1, 2).astype(jnp.float32)
    x, y = flow[..., 0], flow[..., 1]
    ix = ((x + 1.0) * N - 1.0) * 0.5
    iy = ((y + 1.0) * N - 1.0) * 0.5
    x0, y0 = jnp.floor(ix), jnp.floor(iy)
    wx1, wy1 = ix - x0, iy - y0
    wx0, wy0 = 1.0 - wx1, 1.0 - wy1
    dt = dts_barrier.reshape(B, -1).astype(jnp.float32)

    def corner(xc, yc, w):
        valid = ((xc >= 0) & (xc <= N - 1) & (yc >= 0) & (yc <= N - 1)).astype(jnp.float32)
        xi = jnp.clip(xc, 0, N - 1).astype(jnp.int32)
        yi = jnp.clip(yc, 0, N - 1).astype(jnp.int32)
        return jnp.take_along_axis(dt, yi * N + xi, axis=1) * w * valid

    s = (corner(x0, y0, wx0 * wy0) + corner(x0 + 1, y0, wx1 * wy0) +
         corner(x0, y0 + 1, wx0 * wy1) + corner(x0 + 1, y0 + 1, wx1 * wy1))
    return jnp.mean(s)


def _ref_tex_cycle(flow, prob, aggr):
    nb, nf = flow.shape[0], flow.shape[1]
    avg = flow.reshape(nb, nf, -1, 2).mean(axis=2)
    member = jnp.any(aggr[:, None, :] == jnp.arange(nf)[None, :, None], axis=-1)
    mask = member.astype(jnp.float32)[:, :, None]
    loss = jnp.mean(((avg - prob) * mask) ** 2)
    return loss, avg[0, 0:10, :]


# ----------------------------------------------------------------------------
if __name__ == "__main__":
    key = jax.random.PRNGKey(0)
    ks = jax.random.split(key, 16)

    bs = 2
    K = 4                  # num_hypo_cams
    H = W = 16             # image_size
    nverts = 12
    F = 8                  # faces
    T = 4                  # texture resolution
    N = 16                 # distance-transform resolution

    vs = jax.random.normal(ks[0], (bs, nverts, 3), jnp.float32)
    fs = jax.random.randint(ks[1], (bs, F, 3), 0, nverts).astype(jnp.int32)
    cams_all_hypo = jax.random.normal(ks[2], (bs, K, 7), jnp.float32)
    cam_probs = jax.nn.softmax(jax.random.normal(ks[3], (bs, K), jnp.float32), axis=-1)
    proj_cam = jax.random.normal(ks[4], (bs, 7), jnp.float32)
    rgbs = jax.random.uniform(ks[5], (bs, 3, H, W), jnp.float32)
    masks_gt = (jax.random.uniform(ks[6], (bs, H, W), jnp.float32) > 0.5).astype(jnp.float32)
    masks_pred = jax.random.uniform(ks[7], (bs * K, H, W), jnp.float32)
    tx = jax.random.uniform(ks[8], (bs, F, T * T, 3), jnp.float32)
    tex_flow = jax.random.uniform(ks[9], (bs, F, T, T, 2), jnp.float32, minval=-1.0, maxval=1.0)
    dts_barrier = jax.random.uniform(ks[10], (bs, 1, N, N), jnp.float32)

    # Deterministic stand-ins for renderer outputs.
    texture_pred = jax.random.uniform(ks[11], (bs * K, 3, H, W), jnp.float32)
    p2f_info = jax.random.uniform(ks[12], (bs, F, 2), jnp.float32, minval=-1.0, maxval=1.0)
    aggr_info_raw = jax.random.randint(ks[13], (bs, 3, H, W), 0, F).astype(jnp.int32)

    outs = multi_texture_loss_forward(
        vs, fs, cams_all_hypo, cam_probs, proj_cam, rgbs,
        masks_gt, masks_pred, tx, tex_flow, dts_barrier,
        texture_pred, p2f_info, aggr_info_raw,
        num_hypo_cams=K, image_size=H,
    )
    outs = jax.block_until_ready(outs)

    # --- light self-checks against pure-JAX references ---
    imgs = jnp.broadcast_to(rgbs[:, None], (bs, K, 3, H, W)).reshape(-1, 3, H, W)
    masks_gt_rep = jnp.broadcast_to(masks_gt[:, None], (bs, K, H, W)).reshape(-1, H, W)
    got1 = texture_loss_masks_per_sample(texture_pred, imgs, masks_gt_rep, masks_pred)
    exp1 = _ref_texture_mask_loss(texture_pred, imgs, masks_gt_rep, masks_pred)
    np.testing.assert_allclose(np.asarray(got1), np.asarray(exp1), rtol=2e-3, atol=1e-5)

    got2 = texture_dt_loss_fn(tex_flow, dts_barrier)
    exp2 = _ref_texture_dt_loss(tex_flow, dts_barrier)
    np.testing.assert_allclose(float(got2), float(exp2), rtol=2e-3, atol=1e-5)

    aggr_info = aggr_info_raw[:, 1, :, :].reshape(bs, -1)
    got3, got3_avg = tex_cycle_fn(tex_flow, p2f_info, aggr_info)
    exp3, exp3_avg = _ref_tex_cycle(tex_flow, p2f_info, aggr_info)
    np.testing.assert_allclose(float(got3), float(exp3), rtol=2e-3, atol=1e-6)
    np.testing.assert_allclose(np.asarray(got3_avg), np.asarray(exp3_avg), rtol=2e-3, atol=1e-6)

    print("KERNEL_OK")
</pallas_src>

<mosaic_0001>
module attributes {stable_mosaic.version = 11 : i64} {
  func.func @_tex_mask_loss_kernel(%arg0: i32, %arg1: memref<8x768xf32, #tpu.memory_space<vmem>>, %arg2: memref<8x768xf32, #tpu.memory_space<vmem>>, %arg3: memref<8x256xf32, #tpu.memory_space<vmem>>, %arg4: memref<8x256xf32, #tpu.memory_space<vmem>>, %arg5: memref<8x128xf32, #tpu.memory_space<vmem>>) attributes {dimension_semantics = [#tpu.dimension_semantics<parallel>], iteration_bounds = array<i64: 1>, scalar_prefetch = 0 : i64, scratch_operands = 0 : i64, tpu.core_type = #tpu.core_type<tc>, window_params = [{transform_indices = @transform_0, window_bounds = array<i64: 8, 768>}, {transform_indices = @transform_1, window_bounds = array<i64: 8, 768>}, {transform_indices = @transform_2, window_bounds = array<i64: 8, 256>}, {transform_indices = @transform_3, window_bounds = array<i64: 8, 256>}, {transform_indices = @transform_4, window_bounds = array<i64: 8, 128>}]} {
    %c0 = arith.constant 0 : index
    %c0_0 = arith.constant 0 : index
    %0 = vector.load %arg4[%c0, %c0_0] : memref<8x256xf32, #tpu.memory_space<vmem>>, vector<8x256xf32>
    %c0_1 = arith.constant 0 : index
    %c0_2 = arith.constant 0 : index
    %1 = vector.load %arg3[%c0_1, %c0_2] : memref<8x256xf32, #tpu.memory_space<vmem>>, vector<8x256xf32>
    %cst = arith.constant 0.000000e+00 : f32
    %2 = vector.broadcast %cst : f32 to vector<8x256xf32>
    %c0_3 = arith.constant 0 : index
    %c0_4 = arith.constant 0 : index
    %3 = vector.load %arg1[%c0_3, %c0_4] : memref<8x768xf32, #tpu.memory_space<vmem>>, vector<8x256xf32>
    %4 = arith.mulf %3, %0 : vector<8x256xf32>
    %c0_5 = arith.constant 0 : index
    %c0_6 = arith.constant 0 : index
    %5 = vector.load %arg2[%c0_5, %c0_6] : memref<8x768xf32, #tpu.memory_space<vmem>>, vector<8x256xf32>
    %6 = arith.mulf %5, %1 : vector<8x256xf32>
    %7 = arith.subf %4, %6 : vector<8x256xf32>
    %8 = math.absf %7 : vector<8x256xf32>
    %9 = arith.addf %2, %8 : vector<8x256xf32>
    %c0_7 = arith.constant 0 : index
    %c256 = arith.constant 256 : index
    %10 = vector.load %arg1[%c0_7, %c256] : memref<8x768xf32, #tpu.memory_space<vmem>>, vector<8x256xf32>
    %11 = arith.mulf %10, %0 : vector<8x256xf32>
    %c0_8 = arith.constant 0 : index
    %c256_9 = arith.constant 256 : index
    %12 = vector.load %arg2[%c0_8, %c256_9] : memref<8x768xf32, #tpu.memory_space<vmem>>, vector<8x256xf32>
    %13 = arith.mulf %12, %1 : vector<8x256xf32>
    %14 = arith.subf %11, %13 : vector<8x256xf32>
    %15 = math.absf %14 : vector<8x256xf32>
    %16 = arith.addf %9, %15 : vector<8x256xf32>
    %c0_10 = arith.constant 0 : index
    %c512 = arith.constant 512 : index
    %17 = vector.load %arg1[%c0_10, %c512] : memref<8x768xf32, #tpu.memory_space<vmem>>, vector<8x256xf32>
    %18 = arith.mulf %17, %0 : vector<8x256xf32>
    %c0_11 = arith.constant 0 : index
    %c512_12 = arith.constant 512 : index
    %19 = vector.load %arg2[%c0_11, %c512_12] : memref<8x768xf32, #tpu.memory_space<vmem>>, vector<8x256xf32>
    %20 = arith.mulf %19, %1 : vector<8x256xf32>
    %21 = arith.subf %18, %20 : vector<8x256xf32>
    %22 = math.absf %21 : vector<8x256xf32>
    %23 = arith.addf %16, %22 : vector<8x256xf32>
    %cst_13 = arith.constant dense<0.000000e+00> : vector<8xf32>
    %24 = vector.multi_reduction <add>, %23, %cst_13 [1] : vector<8x256xf32> to vector<8xf32>
    %25 = vector.shape_cast %24 : vector<8xf32> to vector<8x1xf32>
    %26 = vector.shape_cast %25 : vector<8x1xf32> to vector<8x1xf32>
    %27 = vector.broadcast %26 : vector<8x1xf32> to vector<8x128xf32>
    %c0_14 = arith.constant 0 : index
    %c0_15 = arith.constant 0 : index
    %28 = vector.load %arg5[%c0_14, %c0_15] : memref<8x128xf32, #tpu.memory_space<vmem>>, vector<8x128xf32>
    tpu.vector_store %arg5[%c0_14, %c0_15], %27 {strides = array<i32>} : memref<8x128xf32, #tpu.memory_space<vmem>>, vector<8x128xf32>,
    return
  }
  func.func @transform_0(%arg0: i32) -> (i32, i32) {
    %c0_i32 = arith.constant 0 : i32
    %c0_i32_0 = arith.constant 0 : i32
    return %arg0, %c0_i32 : i32, i32
  }
  func.func @transform_1(%arg0: i32) -> (i32, i32) {
    %c0_i32 = arith.constant 0 : i32
    %c0_i32_0 = arith.constant 0 : i32
    return %arg0, %c0_i32 : i32, i32
  }
  func.func @transform_2(%arg0: i32) -> (i32, i32) {
    %c0_i32 = arith.constant 0 : i32
    %c0_i32_0 = arith.constant 0 : i32
    return %arg0, %c0_i32 : i32, i32
  }
  func.func @transform_3(%arg0: i32) -> (i32, i32) {
    %c0_i32 = arith.constant 0 : i32
    %c0_i32_0 = arith.constant 0 : i32
    return %arg0, %c0_i32 : i32, i32
  }
  func.func @transform_4(%arg0: i32) -> (i32, i32) {
    %c0_i32 = arith.constant 0 : i32
    %c0_i32_0 = arith.constant 0 : i32
    return %arg0, %c0_i32 : i32, i32
  }
}

</mosaic_0001>

<bundles_post_ra>
// kernel: tpu_custom_call.1
= control target key start
LH: loop header
LB: loop body
LE: loop exit
PB: predicated region body
PF: predicated region fallthrough
CT: control target
= control target key end

     0   :  { %9 = vsyncpa [#allocation3], 0  ;;  %s290_s0 = inlined_call_operand.hbm [shape: f32[8,768], index: 0, kind: input, shape index: {}]   ;;  %s291_s1 = inlined_call_operand.hbm [shape: f32[8,768], index: 1, kind: input, shape index: {}]   ;;  %s292_s2 = inlined_call_operand.hbm [shape: f32[8,256], index: 2, kind: input, shape index: {}]   ;;  %s293_s3 = inlined_call_operand.hbm [shape: f32[8,256], index: 3, kind: input, shape index: {}]   ;;  %s294_s4 = inlined_call_operand.hbm [shape: f32[8,128], index: 4, kind: output, shape index: {}]  }
   0x1   :  { %10 = vsyncpa [#allocation6], 0 }
   0x2   :  { %11 = vsyncpa [#allocation9], 0 }
   0x3   :  { %12 = vsyncpa [#allocation4], 0  ;;  %s245_s15 = smov [#allocation5]   ;;  %s246_s17 = smov [#allocation2]  }
   0x4   :  { %s29_s16 = sshll.u32 %s245_s15, 4  ;;  %s19_s18 = sshll.u32 %s246_s17, 4  ;;  %s30_s16 = int_to_ptr.vmem [resolvable:$true] %s29_s16  ;;  %s20_s18 = int_to_ptr.vmem [resolvable:$true] %s19_s18 }
   0x5   :  { %s145_s19 = scalar_lea.vmem %s30_s16, 768  ;;  %p150_p1 = scmp.lt.s32.totalorder %s30_s16, %s30_s16 }
   0x6   :  { %p146_p0 = scmp.ne.s32.totalorder %s30_s16, %s145_s19  ;;  %p151_p2 = scmp.lt.s32.totalorder %s145_s19, %s145_s19 }
   0x8   :  { %p152_p3 = por %p151_p2, %p150_p1 }
   0xa   :  { %p153_p4 = pnand %p152_p3, %p146_p0 }
   0xc   :  { %156 = shalt.err (!%p153_p4)
}
   0xd   :  { %32 = dma.hbm_to_vmem [thread:$0]  %s291_s1, 768, %s30_s16, [#allocation6]  }
   0xe   :  { %s165_s22 = scalar_lea.vmem %s20_s18, 768  ;;  %p170_p6 = scmp.lt.s32.totalorder %s20_s18, %s20_s18 }
   0xf   :  { %p166_p5 = scmp.ne.s32.totalorder %s20_s18, %s165_s22  ;;  %p171_p7 = scmp.lt.s32.totalorder %s165_s22, %s165_s22 }
  0x11   :  { %p172_p8 = por %p171_p7, %p170_p6 }
  0x13   :  { %p173_p9 = pnand %p172_p8, %p166_p5 }
  0x15   :  { %176 = shalt.err (!%p173_p9)
}
  0x16   :  { %22 = dma.hbm_to_vmem [thread:$0]  %s290_s0, 768, %s20_s18, [#allocation3]  }
  0x17   :  { %s247_s25 = smov [#allocation7]   ;;  %s248_s27 = smov [#allocation8]  }
  0x18   :  { %s39_s26 = sshll.u32 %s247_s25, 4  ;;  %s49_s28 = sshll.u32 %s248_s27, 4  ;;  %s40_s26 = int_to_ptr.vmem [resolvable:$true] %s39_s26  ;;  %s50_s28 = int_to_ptr.vmem [resolvable:$true] %s49_s28 }
  0x19   :  { %s185_s29 = scalar_lea.vmem %s40_s26, 256  ;;  %p190_p11 = scmp.lt.s32.totalorder %s40_s26, %s40_s26 }
  0x1a   :  { %p186_p10 = scmp.ne.s32.totalorder %s40_s26, %s185_s29  ;;  %p191_p12 = scmp.lt.s32.totalorder %s185_s29, %s185_s29 }
  0x1c   :  { %p192_p13 = por %p191_p12, %p190_p11 }
  0x1e   :  { %p193_p0 = pnand %p192_p13, %p186_p10 }
  0x20   :  { %196 = shalt.err (!%p193_p0)
}
  0x21   :  { %42 = dma.hbm_to_vmem [thread:$0]  %s292_s2, 256, %s40_s26, [#allocation6]  }
  0x22   :  { %s205_s5 = scalar_lea.vmem %s50_s28, 256  ;;  %p210_p2 = scmp.lt.s32.totalorder %s50_s28, %s50_s28 }
  0x23   :  { %p206_p1 = scmp.ne.s32.totalorder %s50_s28, %s205_s5  ;;  %p211_p3 = scmp.lt.s32.totalorder %s205_s5, %s205_s5 }
  0x25   :  { %p212_p4 = por %p211_p3, %p210_p2 }
  0x27   :  { %p213_p5 = pnand %p212_p4, %p206_p1 }
  0x29   :  { %216 = shalt.err (!%p213_p5)
}
  0x2a   :  { %52 = dma.hbm_to_vmem [thread:$0]  %s293_s3, 256, %s50_s28, [#allocation9]  }
  0x2b   :  { %237 = dma.done.wait [#allocation3], 768  }
  0x2c   :  { %238 = vsyncadd [#allocation3], 4294966528 }
  0x2d   :  { %239 = dma.done.wait [#allocation6], 1024  }
  0x2e   :  { %240 = vsyncadd [#allocation6], 4294966272 }
  0x2f   :  { %241 = dma.done.wait [#allocation9], 256  }
  0x30   :  { %242 = vsyncadd [#allocation9], 4294967040  ;;  %v65_v0 = vld [vmem:[#allocation8] sm:$0xff]  ;;  %v66_v1 = vld [vmem:[#allocation8 + $0x8] sm:$0xff]  ;;  %s249_s2 = smov [#allocation10]  }
  0x31   :  { %v67_v2 = vld [vmem:[#allocation7] sm:$0xff]  ;;  %v68_v3 = vld [vmem:[#allocation7 + $0x8] sm:$0xff]  ;;  %v73_v8 = vld [vmem:[#allocation5] sm:$0xff]  ;;  %s121_s3 = sshll.u32 %s249_s2, 4  ;;  %s122_s3 = int_to_ptr.vmem [resolvable:$true] %s121_s3 }
  0x32   :  { %v69_v4 = vld [vmem:[#allocation2] sm:$0xff]  ;;  %v70_v5 = vld [vmem:[#allocation2 + $0x8] sm:$0xff]  ;;  %v74_v9 = vld [vmem:[#allocation5 + $0x8] sm:$0xff]  ;;  %v75_v11 = vmul.f32 %v73_v8, %v67_v2  ;;  %s217_s7 = scalar_lea.vmem %s122_s3, 128  ;;  %p222_p7 = scmp.lt.s32.totalorder %s122_s3, %s122_s3 }
  0x33   :  { %v71_v6 = vmul.f32 %v69_v4, %v65_v0  ;;  %v72_v7 = vmul.f32 %v70_v5, %v66_v1  ;;  %v83_v10 = vld [vmem:[#allocation2 + $0x10] sm:$0xff]  ;;  %v76_v12 = vmul.f32 %v74_v9, %v68_v3  ;;  %v84_v13 = vld [vmem:[#allocation2 + $0x18] sm:$0xff]  ;;  %v87_v15 = vld [vmem:[#allocation5 + $0x10] sm:$0xff]  ;;  %p218_p6 = scmp.ne.s32.totalorder %s122_s3, %s217_s7  ;;  %p223_p8 = scmp.lt.s32.totalorder %s217_s7, %s217_s7 }
  0x34   :  { %v85_v14 = vmul.f32 %v83_v10, %v65_v0  ;;  %v88_v16 = vld [vmem:[#allocation5 + $0x18] sm:$0xff]  ;;  %v86_v17 = vmul.f32 %v84_v13, %v66_v1  ;;  %v89_v18 = vmul.f32 %v87_v15, %v67_v2  ;;  %v97_v20 = vld [vmem:[#allocation2 + $0x20] sm:$0xff]  ;;  %v101_v22 = vld [vmem:[#allocation5 + $0x20] sm:$0xff] }
  0x35   :  { %v90_v19 = vmul.f32 %v88_v16, %v68_v3  ;;  %v98_v21 = vld [vmem:[#allocation2 + $0x28] sm:$0xff]  ;;  %v77_v23 = vsub.f32 %v71_v6, %v75_v11  ;;  %v78_v24 = vsub.f32 %v72_v7, %v76_v12  ;;  %v99_v25 = vmul.f32 %v97_v20, %v65_v0  ;;  %v102_v27 = vld [vmem:[#allocation5 + $0x28] sm:$0xff]  ;;  %p224_p9 = por %p223_p8, %p222_p7 }
  0x36   :  { %v100_v26 = vmul.f32 %v98_v21, %v66_v1  ;;  %v91_v28 = vsub.f32 %v85_v14, %v89_v18  ;;  %v103_v30 = vmul.f32 %v101_v22, %v67_v2  ;;  %v104_v31 = vmul.f32 %v102_v27, %v68_v3 }
  0x37   :  { %v92_v29 = vsub.f32 %v86_v17, %v90_v19  ;;  %v79_v32 = vand.u32 2147483647, %v77_v23  ;;  %v80_v33 = vand.u32 2147483647, %v78_v24  ;;  %p225_p10 = pnand %p224_p9, %p218_p6 }
  0x38   :  { %v93_v34 = vand.u32 2147483647, %v91_v28  ;;  %v105_v36 = vsub.f32 %v99_v25, %v103_v30  ;;  %v106_v37 = vsub.f32 %v100_v26, %v104_v31 }
  0x39   :  { %v94_v35 = vand.u32 2147483647, %v92_v29 }
  0x3a   :  { %v95_v38 = vadd.f32 %v93_v34, %v79_v32  ;;  %v107_v40 = vand.u32 2147483647, %v105_v36  ;;  %v108_v41 = vand.u32 2147483647, %v106_v37 }
  0x3b   :  { %v96_v39 = vadd.f32 %v94_v35, %v80_v33 }
  0x3c   :  { %v109_v42 = vadd.f32 %v107_v40, %v95_v38 }
  0x3d   :  { %v110_v43 = vadd.f32 %v108_v41, %v96_v39 }
  0x3f   :  { %v111_v44 = vadd.f32 %v110_v43, %v109_v42 }
  0x41   :  { %112 = vadd.xlane.f32.xlu0 %v111_v44 }
  0xca   :  { %v113_v45 = vpop.xlane.xlu0 %112 }
  0xcb   :  { %114 = vst [vmem:[#allocation10] sm:$0xff] %v113_v45 }
  0xcc   :  { %228 = shalt.err (!%p225_p10)
}
  0xcd   :  { %124 = dma.vmem_to_hbm [thread:$0]  %s122_s3, 128, %s294_s4, [#allocation4]  }
  0xce   :  { %243 = dma.done.wait [#allocation4], 128  }
  0xcf   :  { %244 = vsyncadd [#allocation4], 4294967168 }
  0xd0   :  { %128 = vsyncpa [#allocation3], 1 }
  0xd1   :  { %129 = vsyncpa [#allocation6], 1 }
  0xd2   :  { %130 = vsyncpa [#allocation9], 1 }
  0xd3   :  { %131 = vsyncpa [#allocation4], 1 }

</bundles_post_ra>
